<compile_context>
chip_gen: v7x
topology: tpu7x:2x2x1
jax: 0.10.0
libtpu: 0.0.40
codegen_flags: <defaults>
</compile_context>

<pallas_src>
import functools

import jax
import jax.numpy as jnp
from jax.experimental import pallas as pl
from jax.experimental.pallas import tpu as pltpu


def _round_up(x, m):
    return ((x + m - 1) // m) * m


# Conservative VMEM budget used for residency / tiling decisions: leaves
# headroom inside v7x's 64 MiB physical VMEM; v5e/v6e (128 MiB) have spare.
_VMEM_BUDGET = 48 * 1024 * 1024


def _choose_feat_tile(D, cap=1024):
    """Reduction-tile size for the feature dim.  Prefers a tile that divides D
    exactly (H*W is usually a multiple of 128) so x never needs an HBM pad/copy."""
    cap = max(128, min(_round_up(cap, 128), _round_up(D, 128)))
    if D % 128 == 0:
        t = cap
        while t >= 128:
            if D % t == 0:
                return t, D
            t -= 128
    tile_d = min(cap, _round_up(D, 128))
    return tile_d, _round_up(D, tile_d)


def _choose_row_tile(N, cap=512):
    """Row-tile size with <~12% padding.  Keeps >=2 row tiles when possible so
    the 'parallel' grid axis can be split across v7x's two TensorCores."""
    tile_n = 8
    for c in (512, 256, 128, 64, 32, 16, 8):
        if c > cap:
            continue
        pad = _round_up(N, c) - N
        if pad <= 0.12 * N:
            tile_n = c
            break
    while tile_n > 8 and _round_up(N, tile_n) // tile_n < 2:
        tile_n //= 2
    return tile_n, _round_up(N, tile_n)


# ----------------------------------------------------------------------------
# Kernel: acc += x_tile @ W_tile on MXU; epilogue subtracts the fused bias.
# grid = (row tiles, D tiles); axis 1 is the reduction over the feature dim.
# ----------------------------------------------------------------------------
def _pca_kernel(x_ref, w_ref, bias_ref, o_ref, *, tile_d, resident_w):
    k = pl.program_id(1)

    @pl.when(k == 0)
    def _():
        o_ref[...] = jnp.zeros_like(o_ref)

    if resident_w:
        # W fully VMEM-resident; slice the current reduction tile in-place.
        d0 = pl.multiple_of(k * tile_d, tile_d)
        w_blk = w_ref[pl.ds(d0, tile_d), :]
    else:
        # W streamed per reduction step.
        w_blk = w_ref[...]

    o_ref[...] += jnp.dot(x_ref[...], w_blk, preferred_element_type=jnp.float32)

    @pl.when(k == pl.num_programs(1) - 1)
    def _():
        o_ref[...] = o_ref[...] - bias_ref[...]


def pca_embedding_forward(x_flat, w_padded, bias_padded, *, K, tile_d,
                          row_tile_cap=512):
    """x_flat: (N, D) unpadded activations (not copied unless padding needed).
    w_padded: (Dpad, Kpad) fused weights (already scaled by 1/(out_std+eps)).
    bias_padded: (1, Kpad) fused bias (same scaling folded in).
    Returns (N, K) float32."""
    N, D = x_flat.shape
    Dpad, Kpad = w_padded.shape
    assert Dpad % tile_d == 0 and Kpad % 128 == 0 and Dpad >= D

    tile_n, Npad = _choose_row_tile(N, cap=row_tile_cap)

    # Pad x only when the tiling actually requires it (avoids a full HBM pass).
    if (Npad, Dpad) != (N, D):
        x_p = jnp.pad(x_flat, ((0, Npad - N), (0, Dpad - D)))
    else:
        x_p = x_flat

    x_itemsize = jnp.dtype(x_p.dtype).itemsize
    w_itemsize = jnp.dtype(w_padded.dtype).itemsize

    grid = (Npad // tile_n, Dpad // tile_d)
    w_resident_bytes = Dpad * Kpad * w_itemsize

    cost = pl.CostEstimate(
        flops=2 * Npad * Dpad * Kpad,
        transcendentals=0,
        bytes_accessed=(Npad * Dpad * x_itemsize + w_resident_bytes
                        + Npad * Kpad * 4 + Kpad * 4),
    )

    def build_and_run(single_buffer_invariants):
        w_buffers = 1 if single_buffer_invariants else 2
        # Keep W fully resident unless its (buffered) footprint eats too much
        # of the VMEM budget; otherwise stream it along the reduction axis.
        resident_w = w_buffers * w_resident_bytes <= int(0.45 * _VMEM_BUDGET)

        if resident_w:
            if single_buffer_invariants:
                w_spec = pl.BlockSpec((Dpad, Kpad), lambda i, k: (0, 0),
                                      pipeline_mode=pl.Buffered(1))
                b_spec = pl.BlockSpec((1, Kpad), lambda i, k: (0, 0),
                                      pipeline_mode=pl.Buffered(1))
            else:
                w_spec = pl.BlockSpec((Dpad, Kpad), lambda i, k: (0, 0))
                b_spec = pl.BlockSpec((1, Kpad), lambda i, k: (0, 0))
            w_bytes = w_buffers * w_resident_bytes
        else:
            w_spec = pl.BlockSpec((tile_d, Kpad), lambda i, k: (k, 0))
            b_spec = pl.BlockSpec((1, Kpad), lambda i, k: (0, 0))
            w_bytes = 2 * tile_d * Kpad * w_itemsize

        # Size-derived VMEM limit (double-buffered x and output blocks).
        need = (2 * tile_n * tile_d * x_itemsize      # x tiles
                + w_bytes                             # weights
                + 2 * Kpad * 4                        # bias
                + 2 * tile_n * Kpad * 4)              # output accumulator
        vmem_limit = min(max(int(1.5 * need) + (4 << 20), 16 << 20), 64 << 20)

        kernel = functools.partial(_pca_kernel, tile_d=tile_d,
                                   resident_w=resident_w)
        return pl.pallas_call(
            kernel,
            out_shape=jax.ShapeDtypeStruct((Npad, Kpad), jnp.float32),
            grid_spec=pltpu.PrefetchScalarGridSpec(
                num_scalar_prefetch=0,
                grid=grid,
                in_specs=[
                    pl.BlockSpec((tile_n, tile_d), lambda i, k: (i, k)),  # x
                    w_spec,                                               # W
                    b_spec,                                               # bias
                ],
                out_specs=pl.BlockSpec((tile_n, Kpad), lambda i, k: (i, 0)),
            ),
            compiler_params=pltpu.CompilerParams(
                dimension_semantics=("parallel", "arbitrary"),
                vmem_limit_bytes=vmem_limit),
            cost_estimate=cost,
        )(x_p, w_padded, bias_padded)

    try:
        out = build_and_run(single_buffer_invariants=True)
    except Exception:
        # Fall back gracefully if this Pallas build rejects pl.Buffered(1) on
        # grid-invariant operands (default 2-deep buffering, may stream W).
        out = build_and_run(single_buffer_invariants=False)

    return out[:N, :K]


# ----------------------------------------------------------------------------
# Deterministic "fit" (what the sklearn Pipeline does in __init__), plain JAX.
# ----------------------------------------------------------------------------
def fit_pca_pipeline(feature, n_modes):
    """feature: (M, H, W).  Returns dict of fitted parameters."""
    M = feature.shape[0]
    D = feature.shape[-2] * feature.shape[-1]
    X = feature.reshape(M, D).astype(jnp.float32)

    # StandardScaler.fit
    sc_mean = X.mean(axis=0)
    sc_std = X.std(axis=0)                      # ddof=0, like sklearn
    sc_std = jnp.where(sc_std == 0.0, 1.0, sc_std)
    Z = (X - sc_mean) / sc_std

    # PCA.fit (whiten=False): center, SVD, take top-K right singular vectors.
    pca_mean = Z.mean(axis=0)
    Zc = Z - pca_mean
    _, _, Vt = jnp.linalg.svd(Zc, full_matrices=False)
    components = Vt[:n_modes]                   # (K, D)

    # Y = fit_transform(X)
    Y = Zc @ components.T
    out_mean = Y.mean(axis=0)
    out_std = Y.std(axis=0)

    return dict(sc_mean=sc_mean, sc_std=sc_std, pca_mean=pca_mean,
                components=components, out_mean=out_mean, out_std=out_std)


class PCAEmbeddingPallas:
    def __init__(self, feature, n_modes, epsilon=1e-14,
                 compute_dtype=jnp.float32, feat_tile_cap=1024,
                 row_tile_cap=512):
        self.epsilon = epsilon
        self.grid_dim = tuple(feature.shape[-2:])
        self.n_modes = n_modes
        self.row_tile_cap = row_tile_cap

        p = fit_pca_pipeline(feature, n_modes)
        self._params = p

        D = self.grid_dim[0] * self.grid_dim[1]
        K = n_modes

        # Fold StandardScaler + PCA centering + output normalization into a
        # single affine map  y = x @ W - b  (all done once at setup):
        #   y0  = ((x - sc_mean)/sc_std - pca_mean) @ C^T
        #   out = (y0 - out_mean) * s,          s = 1/(out_std + eps)
        #   W   = (C^T / sc_std[:, None]) * s[None, :]
        #   b   = ((sc_mean/sc_std + pca_mean) @ C^T + out_mean) * s
        # NOTE: with a bf16 compute_dtype the big x@W / b cancellation can
        # degrade accuracy; default f32 preserves the module's numerics.
        C_T = p["components"].T.astype(jnp.float32)          # (D, K)
        s = 1.0 / (p["out_std"] + epsilon)                   # (K,)
        W = (C_T / p["sc_std"][:, None]) * s[None, :]        # (D, K)
        b = ((p["sc_mean"] / p["sc_std"] + p["pca_mean"]) @ C_T
             + p["out_mean"]) * s                            # (K,)

        # Pre-pad to the kernel tiling (lane-dense Kpad, Dpad | tile_d) so only
        # x moves through HBM at call time.
        self.D, self.K = D, K
        self.tile_d, Dpad = _choose_feat_tile(D, cap=feat_tile_cap)
        Kpad = _round_up(K, 128)
        self.W_padded = jnp.pad(W, ((0, Dpad - D), (0, Kpad - K))
                                ).astype(compute_dtype)
        self.bias_padded = jnp.pad(b.reshape(1, K), ((0, 0), (0, Kpad - K))
                                   ).astype(jnp.float32)

    def __call__(self, x):
        # x: (B, C, H, W)
        B, C, H, W = x.shape
        x_flat = x.reshape(B * C, H * W)
        # MXU wants matching operand dtypes: cast the (small) weights, never
        # the activations -- an extra HBM pass over x would dominate runtime.
        w = self.W_padded
        if w.dtype != x_flat.dtype:
            w = w.astype(x_flat.dtype)
        y = pca_embedding_forward(x_flat, w, self.bias_padded,
                                  K=self.K, tile_d=self.tile_d,
                                  row_tile_cap=self.row_tile_cap)
        return y.reshape(B, C, self.n_modes)

    def reference(self, x):
        p = self._params
        B, C, H, W = x.shape
        X = x.reshape(B * C, H * W).astype(jnp.float32)
        Z = (X - p["sc_mean"]) / p["sc_std"]
        Y = (Z - p["pca_mean"]) @ p["components"].T
        Y = (Y - p["out_mean"]) / (p["out_std"] + self.epsilon)
        return Y.reshape(B, C, self.n_modes)


if __name__ == "__main__":
    key = jax.random.PRNGKey(0)
    k_feat, k_x = jax.random.split(key)

    # "Training" data used to fit the PCA pipeline in __init__ (non-zero mean
    # to actually exercise the folded-bias path).
    H, W = 16, 16
    n_modes = 8
    feature = jax.random.normal(k_feat, (32, H, W), dtype=jnp.float32) * 1.5 + 0.5

    module = PCAEmbeddingPallas(feature, n_modes)

    # Forward input, matching the PyTorch module's expected (B, C, H, W).
    x = jax.random.normal(k_x, (2, 4, H, W), dtype=jnp.float32) + 0.5

    y = jax.block_until_ready(module(x))
    y_ref = module.reference(x)

    assert y.shape == (2, 4, n_modes)
    assert jnp.allclose(y, y_ref, atol=1e-3, rtol=1e-3), "mismatch vs reference"

    print("KERNEL_OK")
</pallas_src>

<mosaic_0001>
module attributes {stable_mosaic.version = 11 : i64} {
  func.func @_pca_kernel(%arg0: i32, %arg1: i32, %arg2: memref<8x256xf32, #tpu.memory_space<vmem>>, %arg3: memref<256x128xf32, #tpu.memory_space<vmem>>, %arg4: memref<1x128xf32, #tpu.memory_space<vmem>>, %arg5: memref<8x128xf32, #tpu.memory_space<vmem>>) attributes {dimension_semantics = [#tpu.dimension_semantics<parallel>, #tpu.dimension_semantics<arbitrary>], iteration_bounds = array<i64: 1, 1>, scalar_prefetch = 0 : i64, scratch_operands = 0 : i64, tpu.core_type = #tpu.core_type<tc>, window_params = [{transform_indices = @transform_0, window_bounds = array<i64: 8, 256>}, {pipeline_mode = #tpu.pipeline_mode<synchronous>, transform_indices = @transform_1, window_bounds = array<i64: 256, 128>}, {pipeline_mode = #tpu.pipeline_mode<synchronous>, transform_indices = @transform_2, window_bounds = array<i64: 1, 128>}, {transform_indices = @transform_3, window_bounds = array<i64: 8, 128>}]} {
    %c0_i32 = arith.constant 0 : i32
    %0 = arith.cmpi eq, %arg1, %c0_i32 : i32
    %1 = arith.extui %0 : i1 to i32
    %c0_i32_0 = arith.constant 0 : i32
    %2 = arith.cmpi ne, %1, %c0_i32_0 : i32
    scf.if %2 {
      %cst_9 = arith.constant 0.000000e+00 : f32
      %15 = vector.broadcast %cst_9 : f32 to vector<8x128xf32>
      %c0_10 = arith.constant 0 : index
      %c0_11 = arith.constant 0 : index
      %16 = vector.load %arg5[%c0_10, %c0_11] : memref<8x128xf32, #tpu.memory_space<vmem>>, vector<8x128xf32>
      tpu.vector_store %arg5[%c0_10, %c0_11], %15 {strides = array<i32>} : memref<8x128xf32, #tpu.memory_space<vmem>>, vector<8x128xf32>,
    } else {
    }
    %c256_i32 = arith.constant 256 : i32
    %3 = arith.muli %arg1, %c256_i32 : i32
    %4 = tpu.assume_multiple %3, 256 : i32
    %5 = arith.index_cast %4 : i32 to index
    %c0 = arith.constant 0 : index
    %6 = vector.load %arg3[%5, %c0] : memref<256x128xf32, #tpu.memory_space<vmem>>, vector<256x128xf32>
    %c0_1 = arith.constant 0 : index
    %c0_2 = arith.constant 0 : index
    %7 = vector.load %arg5[%c0_1, %c0_2] : memref<8x128xf32, #tpu.memory_space<vmem>>, vector<8x128xf32>
    %c0_3 = arith.constant 0 : index
    %c0_4 = arith.constant 0 : index
    %8 = vector.load %arg2[%c0_3, %c0_4] : memref<8x256xf32, #tpu.memory_space<vmem>>, vector<8x256xf32>
    %cst = arith.constant dense<0.000000e+00> : vector<8x128xf32>
    %9 = tpu.matmul %8, %6, %cst {dimension_numbers = #tpu.dot_dimension_numbers<[1], [0], [0], [1], [0, 0, 1, 1], [], []>} : vector<8x256xf32>, vector<256x128xf32>, vector<8x128xf32> -> vector<8x128xf32>
    %10 = arith.addf %7, %9 : vector<8x128xf32>
    %c0_5 = arith.constant 0 : index
    %c0_6 = arith.constant 0 : index
    %11 = vector.load %arg5[%c0_5, %c0_6] : memref<8x128xf32, #tpu.memory_space<vmem>>, vector<8x128xf32>
    tpu.vector_store %arg5[%c0_5, %c0_6], %10 {strides = array<i32>} : memref<8x128xf32, #tpu.memory_space<vmem>>, vector<8x128xf32>,
    %c0_i32_7 = arith.constant 0 : i32
    %12 = arith.cmpi eq, %arg1, %c0_i32_7 : i32
    %13 = arith.extui %12 : i1 to i32
    %c0_i32_8 = arith.constant 0 : i32
    %14 = arith.cmpi ne, %13, %c0_i32_8 : i32
    scf.if %14 {
      %c0_9 = arith.constant 0 : index
      %c0_10 = arith.constant 0 : index
      %15 = vector.load %arg5[%c0_9, %c0_10] : memref<8x128xf32, #tpu.memory_space<vmem>>, vector<8x128xf32>
      %c0_11 = arith.constant 0 : index
      %c0_12 = arith.constant 0 : index
      %16 = vector.load %arg4[%c0_11, %c0_12] : memref<1x128xf32, #tpu.memory_space<vmem>>, vector<1x128xf32>
      %17 = vector.broadcast %16 : vector<1x128xf32> to vector<8x128xf32>
      %18 = arith.subf %15, %17 : vector<8x128xf32>
      %c0_13 = arith.constant 0 : index
      %c0_14 = arith.constant 0 : index
      %19 = vector.load %arg5[%c0_13, %c0_14] : memref<8x128xf32, #tpu.memory_space<vmem>>, vector<8x128xf32>
      tpu.vector_store %arg5[%c0_13, %c0_14], %18 {strides = array<i32>} : memref<8x128xf32, #tpu.memory_space<vmem>>, vector<8x128xf32>,
    } else {
    }
    return
  }
  func.func @transform_0(%arg0: i32, %arg1: i32) -> (i32, i32) {
    %c0_i32 = arith.constant 0 : i32
    return %arg0, %arg1 : i32, i32
  }
  func.func @transform_1(%arg0: i32, %arg1: i32) -> (i32, i32) {
    %c0_i32 = arith.constant 0 : i32
    %c0_i32_0 = arith.constant 0 : i32
    %c0_i32_1 = arith.constant 0 : i32
    return %c0_i32, %c0_i32_0 : i32, i32
  }
  func.func @transform_2(%arg0: i32, %arg1: i32) -> (i32, i32) {
    %c0_i32 = arith.constant 0 : i32
    %c0_i32_0 = arith.constant 0 : i32
    %c0_i32_1 = arith.constant 0 : i32
    return %c0_i32, %c0_i32_0 : i32, i32
  }
  func.func @transform_3(%arg0: i32, %arg1: i32) -> (i32, i32) {
    %c0_i32 = arith.constant 0 : i32
    %c0_i32_0 = arith.constant 0 : i32
    return %arg0, %c0_i32 : i32, i32
  }
}

module attributes {stable_mosaic.version = 11 : i64} {
  func.func @_pca_kernel(%arg0: i32, %arg1: i32, %arg2: memref<8x256xf32, #tpu.memory_space<vmem>>, %arg3: memref<256x128xf32, #tpu.memory_space<vmem>>, %arg4: memref<1x128xf32, #tpu.memory_space<vmem>>, %arg5: memref<8x128xf32, #tpu.memory_space<vmem>>) attributes {dimension_semantics = [#tpu.dimension_semantics<parallel>, #tpu.dimension_semantics<arbitrary>], iteration_bounds = array<i64: 1, 1>, scalar_prefetch = 0 : i64, scratch_operands = 0 : i64, tpu.core_type = #tpu.core_type<tc>, window_params = [{transform_indices = @transform_0, window_bounds = array<i64: 8, 256>}, {pipeline_mode = #tpu.pipeline_mode<synchronous>, transform_indices = @transform_1, window_bounds = array<i64: 256, 128>}, {pipeline_mode = #tpu.pipeline_mode<synchronous>, transform_indices = @transform_2, window_bounds = array<i64: 1, 128>}, {transform_indices = @transform_3, window_bounds = array<i64: 8, 128>}]} {
    %c0_i32 = arith.constant 0 : i32
    %0 = arith.cmpi eq, %arg1, %c0_i32 : i32
    %1 = arith.extui %0 : i1 to i32
    %c0_i32_0 = arith.constant 0 : i32
    %2 = arith.cmpi ne, %1, %c0_i32_0 : i32
    scf.if %2 {
      %cst_9 = arith.constant 0.000000e+00 : f32
      %15 = vector.broadcast %cst_9 : f32 to vector<8x128xf32>
      %c0_10 = arith.constant 0 : index
      %c0_11 = arith.constant 0 : index
      %16 = vector.load %arg5[%c0_10, %c0_11] : memref<8x128xf32, #tpu.memory_space<vmem>>, vector<8x128xf32>
      tpu.vector_store %arg5[%c0_10, %c0_11], %15 {strides = array<i32>} : memref<8x128xf32, #tpu.memory_space<vmem>>, vector<8x128xf32>,
    } else {
    }
    %c256_i32 = arith.constant 256 : i32
    %3 = arith.muli %arg1, %c256_i32 : i32
    %4 = tpu.assume_multiple %3, 256 : i32
    %5 = arith.index_cast %4 : i32 to index
    %c0 = arith.constant 0 : index
    %6 = vector.load %arg3[%5, %c0] : memref<256x128xf32, #tpu.memory_space<vmem>>, vector<256x128xf32>
    %c0_1 = arith.constant 0 : index
    %c0_2 = arith.constant 0 : index
    %7 = vector.load %arg5[%c0_1, %c0_2] : memref<8x128xf32, #tpu.memory_space<vmem>>, vector<8x128xf32>
    %c0_3 = arith.constant 0 : index
    %c0_4 = arith.constant 0 : index
    %8 = vector.load %arg2[%c0_3, %c0_4] : memref<8x256xf32, #tpu.memory_space<vmem>>, vector<8x256xf32>
    %cst = arith.constant dense<0.000000e+00> : vector<8x128xf32>
    %9 = tpu.matmul %8, %6, %cst {dimension_numbers = #tpu.dot_dimension_numbers<[1], [0], [0], [1], [0, 0, 1, 1], [], []>} : vector<8x256xf32>, vector<256x128xf32>, vector<8x128xf32> -> vector<8x128xf32>
    %10 = arith.addf %7, %9 : vector<8x128xf32>
    %c0_5 = arith.constant 0 : index
    %c0_6 = arith.constant 0 : index
    %11 = vector.load %arg5[%c0_5, %c0_6] : memref<8x128xf32, #tpu.memory_space<vmem>>, vector<8x128xf32>
    tpu.vector_store %arg5[%c0_5, %c0_6], %10 {strides = array<i32>} : memref<8x128xf32, #tpu.memory_space<vmem>>, vector<8x128xf32>,
    %c0_i32_7 = arith.constant 0 : i32
    %12 = arith.cmpi eq, %arg1, %c0_i32_7 : i32
    %13 = arith.extui %12 : i1 to i32
    %c0_i32_8 = arith.constant 0 : i32
    %14 = arith.cmpi ne, %13, %c0_i32_8 : i32
    scf.if %14 {
      %c0_9 = arith.constant 0 : index
      %c0_10 = arith.constant 0 : index
      %15 = vector.load %arg5[%c0_9, %c0_10] : memref<8x128xf32, #tpu.memory_space<vmem>>, vector<8x128xf32>
      %c0_11 = arith.constant 0 : index
      %c0_12 = arith.constant 0 : index
      %16 = vector.load %arg4[%c0_11, %c0_12] : memref<1x128xf32, #tpu.memory_space<vmem>>, vector<1x128xf32>
      %17 = vector.broadcast %16 : vector<1x128xf32> to vector<8x128xf32>
      %18 = arith.subf %15, %17 : vector<8x128xf32>
      %c0_13 = arith.constant 0 : index
      %c0_14 = arith.constant 0 : index
      %19 = vector.load %arg5[%c0_13, %c0_14] : memref<8x128xf32, #tpu.memory_space<vmem>>, vector<8x128xf32>
      tpu.vector_store %arg5[%c0_13, %c0_14], %18 {strides = array<i32>} : memref<8x128xf32, #tpu.memory_space<vmem>>, vector<8x128xf32>,
    } else {
    }
    return
  }
  func.func @transform_0(%arg0: i32, %arg1: i32) -> (i32, i32) {
    %c0_i32 = arith.constant 0 : i32
    return %arg0, %arg1 : i32, i32
  }
  func.func @transform_1(%arg0: i32, %arg1: i32) -> (i32, i32) {
    %c0_i32 = arith.constant 0 : i32
    %c0_i32_0 = arith.constant 0 : i32
    %c0_i32_1 = arith.constant 0 : i32
    return %c0_i32, %c0_i32_0 : i32, i32
  }
  func.func @transform_2(%arg0: i32, %arg1: i32) -> (i32, i32) {
    %c0_i32 = arith.constant 0 : i32
    %c0_i32_0 = arith.constant 0 : i32
    %c0_i32_1 = arith.constant 0 : i32
    return %c0_i32, %c0_i32_0 : i32, i32
  }
  func.func @transform_3(%arg0: i32, %arg1: i32) -> (i32, i32) {
    %c0_i32 = arith.constant 0 : i32
    %c0_i32_0 = arith.constant 0 : i32
    return %arg0, %c0_i32 : i32, i32
  }
}

</mosaic_0001>

<bundles_post_ra>
// kernel: tpu_custom_call.1
= control target key start
LH: loop header
LB: loop body
LE: loop exit
PB: predicated region body
PF: predicated region fallthrough
CT: control target
= control target key end

     0   :  { %8 = vsyncpa [#allocation3], 0  ;;  %s401_s0 = inlined_call_operand.hbm [shape: f32[8,256], index: 0, kind: input, shape index: {}]   ;;  %s402_s1 = inlined_call_operand.hbm [shape: f32[256,128], index: 1, kind: input, shape index: {}]   ;;  %s403_s2 = inlined_call_operand.vmem [shape: f32[1,128], index: 2, kind: input, shape index: {}]   ;;  %s404_s3 = inlined_call_operand.hbm [shape: f32[8,128], index: 3, kind: output, shape index: {}]  }
   0x1   :  { %9 = vsyncpa [#allocation6], 0 }
   0x2   :  { %10 = vsyncpa [#allocation4], 0  ;;  %s330_s12 = smov [#allocation2]   ;;  %s331_s14 = smov [#allocation5]  }
   0x3   :  { %s17_s13 = sshll.u32 %s330_s12, 4  ;;  %s26_s15 = sshll.u32 %s331_s14, 4  ;;  %s18_s13 = int_to_ptr.vmem [resolvable:$true] %s17_s13  ;;  %s355_s15 = int_to_ptr.vmem [resolvable:$true] %s26_s15 }
   0x4   :  { %s258_s18 = scalar_lea.hbm %s401_s0, 256 }
   0x5   :  { %p259_p0 = scmp.ne.s32.totalorder %s401_s0, %s258_s18  ;;  %p262_p1 = scmp.lt.u32.totalorder %s258_s18, %s401_s0 }
   0x7   :  { %p264_p2 = pnand %p262_p1, %p259_p0 }
   0x9   :  { %267 = shalt.err (!%p264_p2)
}
   0xa   :  { %s268_s23 = scalar_lea.vmem %s18_s13, 256  ;;  %p273_p4 = scmp.lt.s32.totalorder %s18_s13, %s18_s13 }
   0xb   :  { %p269_p3 = scmp.ne.s32.totalorder %s18_s13, %s268_s23  ;;  %p274_p5 = scmp.lt.s32.totalorder %s268_s23, %s268_s23 }
   0xd   :  { %p275_p6 = por %p274_p5, %p273_p4 }
   0xf   :  { %p276_p7 = pnand %p275_p6, %p269_p3 }
  0x11   :  { %279 = shalt.err (!%p276_p7)
}
  0x12   :  { %20 = dma.hbm_to_vmem [thread:$0]  %s401_s0, 256, %s18_s13, [#allocation3]  }
  0x13   :  { %s280_s28 = scalar_lea.hbm %s402_s1, 4096 }
  0x14   :  { %p281_p8 = scmp.ne.s32.totalorder %s402_s1, %s280_s28  ;;  %p284_p9 = scmp.lt.u32.totalorder %s280_s28, %s402_s1 }
  0x16   :  { %p286_p10 = pnand %p284_p9, %p281_p8 }
  0x18   :  { %289 = shalt.err (!%p286_p10)
}
  0x19   :  { %s290_s6 = scalar_lea.vmem %s355_s15, 4096  ;;  %p295_p12 = scmp.lt.s32.totalorder %s355_s15, %s355_s15 }
  0x1a   :  { %p291_p11 = scmp.ne.s32.totalorder %s355_s15, %s290_s6  ;;  %p296_p13 = scmp.lt.s32.totalorder %s290_s6, %s290_s6 }
  0x1c   :  { %p297_p0 = por %p296_p13, %p295_p12 }
  0x1e   :  { %p298_p1 = pnand %p297_p0, %p291_p11 }
  0x20   :  { %301 = shalt.err (!%p298_p1)
}
  0x21   :  { %s332_s0 = smov 128   ;;  %s333_s7 = smov 8  }
  0x22   :  { %32 = dma.hbm_to_vmem [thread:$0]  %s402_s1, 4096, %s355_s15, [#allocation6], %s332_s0, %s332_s0, %s333_s7  }
  0x23   :  { %324 = dma.done.wait [#allocation3], 256  }
  0x24   :  { %325 = vsyncadd [#allocation3], 4294967040 }
  0x25   :  { %326 = dma.done.wait [#allocation6], 4096  }
  0x26   :  { %327 = vsyncadd [#allocation6], 4294963200  ;;  %v64_v0 = vld [vmem:[#allocation5 + $0x80] sm:$0xff]  ;;  %v65_v1 = vld [vmem:[#allocation5 + $0x88] sm:$0xff]  ;;  %s334_s11 = smov [#allocation7]  }
  0x27   :  { %v48_v2 = vld [vmem:[#allocation5] sm:$0xff]  ;;  %v220_v3 = vpack.c.bf16 %v65_v1, %v64_v0  ;;  %v49_v4 = vld [vmem:[#allocation5 + $0x8] sm:$0xff]  ;;  %v66_v5 = vld [vmem:[#allocation5 + $0x90] sm:$0xff]  ;;  %s174_s12 = sshll.u32 %s334_s11, 4  ;;  %s175_s12 = int_to_ptr.vmem [resolvable:$true] %s174_s12 }
  0x28   :  { %v67_v6 = vld [vmem:[#allocation5 + $0x98] sm:$0xff]  ;;  %v222_v7 = vpack.c.bf16 %v49_v4, %v48_v2  ;;  %v50_v9 = vld [vmem:[#allocation5 + $0x10] sm:$0xff]  ;;  %v68_v11 = vld [vmem:[#allocation5 + $0xa0] sm:$0xff]  ;;  %s302_s13 = scalar_lea.vmem %s175_s12, 128  ;;  %p307_p3 = scmp.lt.s32.totalorder %s175_s12, %s175_s12 }
  0x29   :  { %v224_v8 = vpack.c.bf16 %v67_v6, %v66_v5  ;;  %v51_v10 = vld [vmem:[#allocation5 + $0x18] sm:$0xff]  ;;  %221 = vmatprep.subr.bf16.mxu0 %v220_v3  ;;  %v69_v12 = vld [vmem:[#allocation5 + $0xa8] sm:$0xff]  ;;  %v52_v15 = vld [vmem:[#allocation5 + $0x20] sm:$0xff]  ;;  %p303_p2 = scmp.ne.s32.totalorder %s175_s12, %s302_s13  ;;  %p308_p4 = scmp.lt.s32.totalorder %s302_s13, %s302_s13 }
  0x2a   :  { %223 = vmatpush3.bf16.msra.mxu0 %v222_v7  ;;  %v226_v13 = vpack.c.bf16 %v51_v10, %v50_v9  ;;  %v228_v14 = vpack.c.bf16 %v69_v12, %v68_v11  ;;  %v53_v16 = vld [vmem:[#allocation5 + $0x28] sm:$0xff]  ;;  %v70_v17 = vld [vmem:[#allocation5 + $0xb0] sm:$0xff]  ;;  %v71_v18 = vld [vmem:[#allocation5 + $0xb8] sm:$0xff] }
  0x2b   :  { %225 = vmatprep.subr.bf16.mxu0 %v224_v8  ;;  %v230_v19 = vpack.c.bf16 %v53_v16, %v52_v15  ;;  %v232_v20 = vpack.c.bf16 %v71_v18, %v70_v17  ;;  %v54_v21 = vld [vmem:[#allocation5 + $0x30] sm:$0xff]  ;;  %v55_v22 = vld [vmem:[#allocation5 + $0x38] sm:$0xff]  ;;  %v72_v23 = vld [vmem:[#allocation5 + $0xc0] sm:$0xff]  ;;  %p309_p5 = por %p308_p4, %p307_p3 }
  0x2c   :  { %v73_v24 = vld [vmem:[#allocation5 + $0xc8] sm:$0xff]  ;;  %v82_v25 = vld [vmem:[#allocation2 + $0x8] sm:$0xff]  ;;  %v234_v26 = vpack.c.bf16 %v55_v22, %v54_v21  ;;  %v56_v28 = vld [vmem:[#allocation5 + $0x40] sm:$0xff] }
  0x2d   :  { %147 = vmatprep.mubr.f32.mxu0 %v82_v25  ;;  %v236_v27 = vpack.c.bf16 %v73_v24, %v72_v23  ;;  %v57_v29 = vld [vmem:[#allocation5 + $0x48] sm:$0xff]  ;;  %v74_v30 = vld [vmem:[#allocation5 + $0xd0] sm:$0xff]  ;;  %v75_v31 = vld [vmem:[#allocation5 + $0xd8] sm:$0xff]  ;;  %p310_p6 = pnand %p309_p5, %p303_p2 }
  0x2e   :  { %227 = vmatpush3.bf16.msra.mxu0 %v226_v13  ;;  %v238_v32 = vpack.c.bf16 %v57_v29, %v56_v28  ;;  %v240_v33 = vpack.c.bf16 %v75_v31, %v74_v30  ;;  %v58_v34 = vld [vmem:[#allocation5 + $0x50] sm:$0xff]  ;;  %v59_v35 = vld [vmem:[#allocation5 + $0x58] sm:$0xff]  ;;  %v76_v36 = vld [vmem:[#allocation5 + $0xe0] sm:$0xff] }
  0x2f   :  { %229 = vmatprep.subr.bf16.mxu0 %v228_v14  ;;  %v77_v37 = vld [vmem:[#allocation5 + $0xe8] sm:$0xff]  ;;  %v242_v38 = vpack.c.bf16 %v59_v35, %v58_v34  ;;  %v60_v40 = vld [vmem:[#allocation5 + $0x60] sm:$0xff]  ;;  %v78_v42 = vld [vmem:[#allocation5 + $0xf0] sm:$0xff] }
  0x30   :  { %v244_v39 = vpack.c.bf16 %v77_v37, %v76_v36  ;;  %v61_v41 = vld [vmem:[#allocation5 + $0x68] sm:$0xff]  ;;  %v79_v43 = vld [vmem:[#allocation5 + $0xf8] sm:$0xff]  ;;  %v62_v46 = vld [vmem:[#allocation5 + $0x70] sm:$0xff] }
  0x31   :  { %v246_v44 = vpack.c.bf16 %v61_v41, %v60_v40  ;;  %v248_v45 = vpack.c.bf16 %v79_v43, %v78_v42  ;;  %v63_v47 = vld [vmem:[#allocation5 + $0x78] sm:$0xff]  ;;  %v81_v49 = vld [vmem:[#allocation2] sm:$0xff] }
  0x32   :  { %231 = vmatpush3.bf16.msra.mxu0 %v230_v19  ;;  %v250_v48 = vpack.c.bf16 %v63_v47, %v62_v46  ;;  %v184_v53 = vld [vmem:[%s403_s2] ss:$0 sm:$0xff] }
  0x33   :  { %233 = vmatprep.subr.bf16.mxu0 %v232_v20 }
  0x36   :  { %235 = vmatpush3.bf16.msra.mxu0 %v234_v26 }
  0x37   :  { %237 = vmatprep.subr.bf16.mxu0 %v236_v27 }
  0x3a   :  { %239 = vmatpush3.bf16.msra.mxu0 %v238_v32 }
  0x3b   :  { %241 = vmatprep.subr.bf16.mxu0 %v240_v33 }
  0x3e   :  { %243 = vmatpush3.bf16.msra.mxu0 %v242_v38 }
  0x3f   :  { %245 = vmatprep.subr.bf16.mxu0 %v244_v39 }
  0x42   :  { %247 = vmatpush3.bf16.msra.mxu0 %v246_v44 }
  0x43   :  { %249 = vmatprep.subr.bf16.mxu0 %v248_v45 }
  0x46   :  { %251 = vmatpush3.bf16.msra.mxu0 %v250_v48 }
  0x49   :  { %148 = vmatmul.mubr.f32.vlgmr.msra.gmra.mrb[0].mxu0 %v81_v49 }
 0x11c   :  { %v217_v50 = vpop.f32.mrb[0].mxu0 }
 0x11d   :  { %v218_v51 = vpop.f32.mrb[1].mxu0 }
 0x11e   :  { %v219_v52 = vadd.f32 %v218_v51, %v217_v50 }
 0x120   :  { %v166_v54 = vsub.f32 %v219_v52, %v184_v53 }
 0x122   :  { %167 = vst [vmem:[#allocation7] sm:$0xff] %v166_v54 }
 0x123   :  { %313 = shalt.err (!%p310_p6)
}
 0x124   :  { %s314_s16 = scalar_lea.hbm %s404_s3, 128 }
 0x125   :  { %p315_p7 = scmp.ne.s32.totalorder %s404_s3, %s314_s16  ;;  %p318_p8 = scmp.lt.u32.totalorder %s314_s16, %s404_s3 }
 0x127   :  { %p320_p9 = pnand %p318_p8, %p315_p7 }
 0x129   :  { %323 = shalt.err (!%p320_p9)
}
 0x12a   :  { %177 = dma.vmem_to_hbm [thread:$0]  %s175_s12, 128, %s404_s3, [#allocation4]  }
 0x12b   :  { %328 = dma.done.wait [#allocation4], 128  }
 0x12c   :  { %329 = vsyncadd [#allocation4], 4294967168 }
 0x12d   :  { %181 = vsyncpa [#allocation3], 1 }
 0x12e   :  { %182 = vsyncpa [#allocation6], 1 }
 0x12f   :  { %183 = vsyncpa [#allocation4], 1 }

// kernel: tpu_custom_call.1
= control target key start
LH: loop header
LB: loop body
LE: loop exit
PB: predicated region body
PF: predicated region fallthrough
CT: control target
= control target key end

     0   :  { %8 = vsyncpa [#allocation3], 0  ;;  %s401_s0 = inlined_call_operand.hbm [shape: f32[8,256], index: 0, kind: input, shape index: {}]   ;;  %s402_s1 = inlined_call_operand.hbm [shape: f32[256,128], index: 1, kind: input, shape index: {}]   ;;  %s403_s2 = inlined_call_operand.vmem [shape: f32[1,128], index: 2, kind: input, shape index: {}]   ;;  %s404_s3 = inlined_call_operand.hbm [shape: f32[8,128], index: 3, kind: output, shape index: {}]  }
   0x1   :  { %9 = vsyncpa [#allocation6], 0 }
   0x2   :  { %10 = vsyncpa [#allocation4], 0  ;;  %s330_s12 = smov [#allocation2]   ;;  %s331_s14 = smov [#allocation5]  }
   0x3   :  { %s17_s13 = sshll.u32 %s330_s12, 4  ;;  %s26_s15 = sshll.u32 %s331_s14, 4  ;;  %s18_s13 = int_to_ptr.vmem [resolvable:$true] %s17_s13  ;;  %s355_s15 = int_to_ptr.vmem [resolvable:$true] %s26_s15 }
   0x4   :  { %s258_s18 = scalar_lea.hbm %s401_s0, 256 }
   0x5   :  { %p259_p0 = scmp.ne.s32.totalorder %s401_s0, %s258_s18  ;;  %p262_p1 = scmp.lt.u32.totalorder %s258_s18, %s401_s0 }
   0x7   :  { %p264_p2 = pnand %p262_p1, %p259_p0 }
   0x9   :  { %267 = shalt.err (!%p264_p2)
}
   0xa   :  { %s268_s23 = scalar_lea.vmem %s18_s13, 256  ;;  %p273_p4 = scmp.lt.s32.totalorder %s18_s13, %s18_s13 }
   0xb   :  { %p269_p3 = scmp.ne.s32.totalorder %s18_s13, %s268_s23  ;;  %p274_p5 = scmp.lt.s32.totalorder %s268_s23, %s268_s23 }
   0xd   :  { %p275_p6 = por %p274_p5, %p273_p4 }
   0xf   :  { %p276_p7 = pnand %p275_p6, %p269_p3 }
  0x11   :  { %279 = shalt.err (!%p276_p7)
}
  0x12   :  { %20 = dma.hbm_to_vmem [thread:$0]  %s401_s0, 256, %s18_s13, [#allocation3]  }
  0x13   :  { %s280_s28 = scalar_lea.hbm %s402_s1, 4096 }
  0x14   :  { %p281_p8 = scmp.ne.s32.totalorder %s402_s1, %s280_s28  ;;  %p284_p9 = scmp.lt.u32.totalorder %s280_s28, %s402_s1 }
  0x16   :  { %p286_p10 = pnand %p284_p9, %p281_p8 }
  0x18   :  { %289 = shalt.err (!%p286_p10)
}
  0x19   :  { %s290_s6 = scalar_lea.vmem %s355_s15, 4096  ;;  %p295_p12 = scmp.lt.s32.totalorder %s355_s15, %s355_s15 }
  0x1a   :  { %p291_p11 = scmp.ne.s32.totalorder %s355_s15, %s290_s6  ;;  %p296_p13 = scmp.lt.s32.totalorder %s290_s6, %s290_s6 }
  0x1c   :  { %p297_p0 = por %p296_p13, %p295_p12 }
  0x1e   :  { %p298_p1 = pnand %p297_p0, %p291_p11 }
  0x20   :  { %301 = shalt.err (!%p298_p1)
}
  0x21   :  { %s332_s0 = smov 128   ;;  %s333_s7 = smov 8  }
  0x22   :  { %32 = dma.hbm_to_vmem [thread:$0]  %s402_s1, 4096, %s355_s15, [#allocation6], %s332_s0, %s332_s0, %s333_s7  }
  0x23   :  { %324 = dma.done.wait [#allocation3], 256  }
  0x24   :  { %325 = vsyncadd [#allocation3], 4294967040 }
  0x25   :  { %326 = dma.done.wait [#allocation6], 4096  }
  0x26   :  { %327 = vsyncadd [#allocation6], 4294963200  ;;  %v64_v0 = vld [vmem:[#allocation5 + $0x80] sm:$0xff]  ;;  %v65_v1 = vld [vmem:[#allocation5 + $0x88] sm:$0xff]  ;;  %s334_s11 = smov [#allocation7]  }
  0x27   :  { %v48_v2 = vld [vmem:[#allocation5] sm:$0xff]  ;;  %v220_v3 = vpack.c.bf16 %v65_v1, %v64_v0  ;;  %v49_v4 = vld [vmem:[#allocation5 + $0x8] sm:$0xff]  ;;  %v66_v5 = vld [vmem:[#allocation5 + $0x90] sm:$0xff]  ;;  %s174_s12 = sshll.u32 %s334_s11, 4  ;;  %s175_s12 = int_to_ptr.vmem [resolvable:$true] %s174_s12 }
  0x28   :  { %v67_v6 = vld [vmem:[#allocation5 + $0x98] sm:$0xff]  ;;  %v222_v7 = vpack.c.bf16 %v49_v4, %v48_v2  ;;  %v50_v9 = vld [vmem:[#allocation5 + $0x10] sm:$0xff]  ;;  %v68_v11 = vld [vmem:[#allocation5 + $0xa0] sm:$0xff]  ;;  %s302_s13 = scalar_lea.vmem %s175_s12, 128  ;;  %p307_p3 = scmp.lt.s32.totalorder %s175_s12, %s175_s12 }
  0x29   :  { %v224_v8 = vpack.c.bf16 %v67_v6, %v66_v5  ;;  %v51_v10 = vld [vmem:[#allocation5 + $0x18] sm:$0xff]  ;;  %221 = vmatprep.subr.bf16.mxu0 %v220_v3  ;;  %v69_v12 = vld [vmem:[#allocation5 + $0xa8] sm:$0xff]  ;;  %v52_v15 = vld [vmem:[#allocation5 + $0x20] sm:$0xff]  ;;  %p303_p2 = scmp.ne.s32.totalorder %s175_s12, %s302_s13  ;;  %p308_p4 = scmp.lt.s32.totalorder %s302_s13, %s302_s13 }
  0x2a   :  { %223 = vmatpush3.bf16.msra.mxu0 %v222_v7  ;;  %v226_v13 = vpack.c.bf16 %v51_v10, %v50_v9  ;;  %v228_v14 = vpack.c.bf16 %v69_v12, %v68_v11  ;;  %v53_v16 = vld [vmem:[#allocation5 + $0x28] sm:$0xff]  ;;  %v70_v17 = vld [vmem:[#allocation5 + $0xb0] sm:$0xff]  ;;  %v71_v18 = vld [vmem:[#allocation5 + $0xb8] sm:$0xff] }
  0x2b   :  { %225 = vmatprep.subr.bf16.mxu0 %v224_v8  ;;  %v230_v19 = vpack.c.bf16 %v53_v16, %v52_v15  ;;  %v232_v20 = vpack.c.bf16 %v71_v18, %v70_v17  ;;  %v54_v21 = vld [vmem:[#allocation5 + $0x30] sm:$0xff]  ;;  %v55_v22 = vld [vmem:[#allocation5 + $0x38] sm:$0xff]  ;;  %v72_v23 = vld [vmem:[#allocation5 + $0xc0] sm:$0xff]  ;;  %p309_p5 = por %p308_p4, %p307_p3 }
  0x2c   :  { %v73_v24 = vld [vmem:[#allocation5 + $0xc8] sm:$0xff]  ;;  %v82_v25 = vld [vmem:[#allocation2 + $0x8] sm:$0xff]  ;;  %v234_v26 = vpack.c.bf16 %v55_v22, %v54_v21  ;;  %v56_v28 = vld [vmem:[#allocation5 + $0x40] sm:$0xff] }
  0x2d   :  { %147 = vmatprep.mubr.f32.mxu0 %v82_v25  ;;  %v236_v27 = vpack.c.bf16 %v73_v24, %v72_v23  ;;  %v57_v29 = vld [vmem:[#allocation5 + $0x48] sm:$0xff]  ;;  %v74_v30 = vld [vmem:[#allocation5 + $0xd0] sm:$0xff]  ;;  %v75_v31 = vld [vmem:[#allocation5 + $0xd8] sm:$0xff]  ;;  %p310_p6 = pnand %p309_p5, %p303_p2 }
  0x2e   :  { %227 = vmatpush3.bf16.msra.mxu0 %v226_v13  ;;  %v238_v32 = vpack.c.bf16 %v57_v29, %v56_v28  ;;  %v240_v33 = vpack.c.bf16 %v75_v31, %v74_v30  ;;  %v58_v34 = vld [vmem:[#allocation5 + $0x50] sm:$0xff]  ;;  %v59_v35 = vld [vmem:[#allocation5 + $0x58] sm:$0xff]  ;;  %v76_v36 = vld [vmem:[#allocation5 + $0xe0] sm:$0xff] }
  0x2f   :  { %229 = vmatprep.subr.bf16.mxu0 %v228_v14  ;;  %v77_v37 = vld [vmem:[#allocation5 + $0xe8] sm:$0xff]  ;;  %v242_v38 = vpack.c.bf16 %v59_v35, %v58_v34  ;;  %v60_v40 = vld [vmem:[#allocation5 + $0x60] sm:$0xff]  ;;  %v78_v42 = vld [vmem:[#allocation5 + $0xf0] sm:$0xff] }
  0x30   :  { %v244_v39 = vpack.c.bf16 %v77_v37, %v76_v36  ;;  %v61_v41 = vld [vmem:[#allocation5 + $0x68] sm:$0xff]  ;;  %v79_v43 = vld [vmem:[#allocation5 + $0xf8] sm:$0xff]  ;;  %v62_v46 = vld [vmem:[#allocation5 + $0x70] sm:$0xff] }
  0x31   :  { %v246_v44 = vpack.c.bf16 %v61_v41, %v60_v40  ;;  %v248_v45 = vpack.c.bf16 %v79_v43, %v78_v42  ;;  %v63_v47 = vld [vmem:[#allocation5 + $0x78] sm:$0xff]  ;;  %v81_v49 = vld [vmem:[#allocation2] sm:$0xff] }
  0x32   :  { %231 = vmatpush3.bf16.msra.mxu0 %v230_v19  ;;  %v250_v48 = vpack.c.bf16 %v63_v47, %v62_v46  ;;  %v184_v53 = vld [vmem:[%s403_s2] ss:$0 sm:$0xff] }
  0x33   :  { %233 = vmatprep.subr.bf16.mxu0 %v232_v20 }
  0x36   :  { %235 = vmatpush3.bf16.msra.mxu0 %v234_v26 }
  0x37   :  { %237 = vmatprep.subr.bf16.mxu0 %v236_v27 }
  0x3a   :  { %239 = vmatpush3.bf16.msra.mxu0 %v238_v32 }
  0x3b   :  { %241 = vmatprep.subr.bf16.mxu0 %v240_v33 }
  0x3e   :  { %243 = vmatpush3.bf16.msra.mxu0 %v242_v38 }
  0x3f   :  { %245 = vmatprep.subr.bf16.mxu0 %v244_v39 }
  0x42   :  { %247 = vmatpush3.bf16.msra.mxu0 %v246_v44 }
  0x43   :  { %249 = vmatprep.subr.bf16.mxu0 %v248_v45 }
  0x46   :  { %251 = vmatpush3.bf16.msra.mxu0 %v250_v48 }
  0x49   :  { %148 = vmatmul.mubr.f32.vlgmr.msra.gmra.mrb[0].mxu0 %v81_v49 }
 0x11c   :  { %v217_v50 = vpop.f32.mrb[0].mxu0 }
 0x11d   :  { %v218_v51 = vpop.f32.mrb[1].mxu0 }
 0x11e   :  { %v219_v52 = vadd.f32 %v218_v51, %v217_v50 }
 0x120   :  { %v166_v54 = vsub.f32 %v219_v52, %v184_v53 }
 0x122   :  { %167 = vst [vmem:[#allocation7] sm:$0xff] %v166_v54 }
 0x123   :  { %313 = shalt.err (!%p310_p6)
}
 0x124   :  { %s314_s16 = scalar_lea.hbm %s404_s3, 128 }
 0x125   :  { %p315_p7 = scmp.ne.s32.totalorder %s404_s3, %s314_s16  ;;  %p318_p8 = scmp.lt.u32.totalorder %s314_s16, %s404_s3 }
 0x127   :  { %p320_p9 = pnand %p318_p8, %p315_p7 }
 0x129   :  { %323 = shalt.err (!%p320_p9)
}
 0x12a   :  { %177 = dma.vmem_to_hbm [thread:$0]  %s175_s12, 128, %s404_s3, [#allocation4]  }
 0x12b   :  { %328 = dma.done.wait [#allocation4], 128  }
 0x12c   :  { %329 = vsyncadd [#allocation4], 4294967168 }
 0x12d   :  { %181 = vsyncpa [#allocation3], 1 }
 0x12e   :  { %182 = vsyncpa [#allocation6], 1 }
 0x12f   :  { %183 = vsyncpa [#allocation4], 1 }

</bundles_post_ra>
